<compile_context>
chip_gen: v7x
topology: tpu7x:2x2x1
jax: 0.10.0
libtpu: 0.0.40
codegen_flags: <defaults>
</compile_context>

<pallas_src>
import functools
import math

import jax
import jax.numpy as jnp
from jax import lax
from jax.experimental import pallas as pl
from jax.experimental.pallas import tpu as pltpu


# Totals below this bypass Pallas entirely: launch + per-step pipeline
# overhead dominates and XLA's fused reduce is already at roofline.
_XLA_FALLBACK_ELEMS = 2048


# ---------------------------------------------------------------------------
# VMEM budgeting / tiling helpers
# ---------------------------------------------------------------------------
@functools.lru_cache(maxsize=None)
def _vmem_budget():
    """(block_working_set_budget, vmem_limit_bytes), derived from the chip."""
    try:
        cap = int(pltpu.get_tpu_info().vmem_capacity_bytes)
    except Exception:  # interpret mode / older jax: assume the smallest (v7x)
        cap = 64 * 1024 * 1024
    cap = max(cap, 32 * 1024 * 1024)
    block_budget = int(cap * 0.35)                      # input+output+acc blocks
    vmem_limit = min(int(cap * 0.80), 128 * 1024 * 1024)
    return block_budget, vmem_limit


def _sublane(dtype):
    """Minimal legal sublane multiple for a block dim of this dtype."""
    item = jnp.dtype(dtype).itemsize
    return 8 * max(1, 4 // item)        # f32 -> 8, bf16 -> 16, int8/fp8 -> 32


def _round_down(v, m):
    return (v // m) * m


def _round_up(v, m):
    return -(-v // m) * m


def _in_spec(block_shape, index_map, buffer_count):
    """Input BlockSpec, with deeper buffering requested for long r grids."""
    if buffer_count > 2:
        try:
            return pl.BlockSpec(block_shape, index_map,
                                pipeline_mode=pl.Buffered(buffer_count))
        except Exception:  # pipeline_mode unsupported: plain double-buffering
            pass
    return pl.BlockSpec(block_shape, index_map)


# ---------------------------------------------------------------------------
# Kernels
# ---------------------------------------------------------------------------
def _partial_sum(x_ref, r_idx, *, r_tile, r_total, ragged, axis, keepdims):
    """f32 partial sum of the current block along `axis`; masks the ragged
    tail of the reduction axis when the block grid does not divide R."""
    x = x_ref[...].astype(jnp.float32)
    if ragged:
        pos = lax.broadcasted_iota(jnp.int32, x.shape, axis) + r_idx * r_tile
        x = jnp.where(pos < r_total, x, 0.0)
    return jnp.sum(x, axis=axis, keepdims=keepdims)


def _mean_whole_kernel(x_ref, o_ref, *, inv_r, axis, keepdims):
    # Whole reduction axis inside this block: one sum + scale, no accumulator,
    # no predicated init/finalize.
    s = jnp.sum(x_ref[...].astype(jnp.float32), axis=axis, keepdims=keepdims)
    o_ref[...] = (s * inv_r).astype(o_ref.dtype)


def _mean_tiled_direct_kernel(x_ref, o_ref, *, inv_r, r_axis, r_tile, r_total,
                              ragged, axis, keepdims):
    # o_ref is float32: accumulate straight into the resident output block
    # (saves the f32 scratch and the finalize copy).
    r = pl.program_id(r_axis)

    @pl.when(r == 0)
    def _():
        o_ref[...] = jnp.zeros_like(o_ref)

    o_ref[...] += _partial_sum(x_ref, r, r_tile=r_tile, r_total=r_total,
                               ragged=ragged, axis=axis, keepdims=keepdims)

    @pl.when(r == pl.num_programs(r_axis) - 1)
    def _():
        o_ref[...] = o_ref[...] * inv_r


def _mean_tiled_scratch_kernel(x_ref, o_ref, acc_ref, *, inv_r, r_axis, r_tile,
                               r_total, ragged, axis, keepdims):
    # Narrow output dtype: accumulate in f32 VMEM scratch, cast at the end.
    r = pl.program_id(r_axis)

    @pl.when(r == 0)
    def _():
        acc_ref[...] = jnp.zeros_like(acc_ref)

    acc_ref[...] += _partial_sum(x_ref, r, r_tile=r_tile, r_total=r_total,
                                 ragged=ragged, axis=axis, keepdims=keepdims)

    @pl.when(r == pl.num_programs(r_axis) - 1)
    def _():
        o_ref[...] = (acc_ref[...] * inv_r).astype(o_ref.dtype)


# ---------------------------------------------------------------------------
# Single-pass drivers
# ---------------------------------------------------------------------------
def _mean_mid_axes(x3, out_dtype, force_r_tile=None):
    """Mean over axis 1 of x3 = (pre, R, post), post > 1.  Returns (pre, post)."""
    pre, R, post = (int(d) for d in x3.shape)
    in_item = jnp.dtype(x3.dtype).itemsize
    out_item = jnp.dtype(out_dtype).itemsize
    budget, vmem_limit = _vmem_budget()

    r_align = _sublane(x3.dtype)          # sublane dim of the input block
    pre_align = _sublane(out_dtype)       # sublane dim of the output block
    min_pre = pre if pre <= pre_align else pre_align

    # ---- post (lane) axis: keep it whole and 128-dense; split only to fit
    # ---- VMEM or to feed v7x's second TensorCore when pre can't split.
    # TODO(synk): a huge post that is NOT a multiple of 128 cannot be tiled
    # legally without lane masking; such pathological widths fall back to one
    # full-post block.
    post_t = post
    if post % 128 == 0 and post > 128:
        per_col_min = (2 * min_pre * r_align * in_item    # input blocks
                       + 2 * min_pre * out_item           # output blocks
                       + min_pre * 4)                     # f32 accumulator
        if per_col_min * post > budget:
            post_t = max(128, _round_down(budget // max(per_col_min, 1), 128))
        elif pre <= pre_align and pre * R * post >= (1 << 18):
            post_t = _round_up(-(-post // 2), 128)        # 2 parallel post steps
    post_steps = -(-post // post_t)

    buffer_count = 2
    if force_r_tile is not None:
        pre_t = min_pre
        r_t = R if force_r_tile >= R else max(r_align,
                                              _round_down(force_r_tile, r_align))
    else:
        per_row_whole = 2 * R * post_t * in_item + 2 * post_t * out_item
        if per_row_whole * min_pre <= budget:
            # DMA-contiguous: full reduction axis in one block.
            r_t = R
            pre_t = budget // per_row_whole
            if pre > pre_align:
                # v7x megacore: keep >= 2 steps on the "parallel" pre axis.
                pre_t = min(pre_t, _round_up(-(-pre // 2), pre_align))
            pre_t = min(pre_t, pre)
            if pre_t < pre:
                pre_t = max(pre_align, _round_down(pre_t, pre_align))
        else:
            # A single min-row slab with full R does not fit: tile R.
            pre_t = min_pre
            fixed = 2 * pre_t * post_t * out_item + pre_t * post_t * 4
            avail = max(budget - fixed, 0)
            r_t = max(r_align,
                      _round_down(avail // (2 * pre_t * post_t * in_item),
                                  r_align))
            r_t = min(r_t, R)
            if -(-R // r_t) >= 8:
                buffer_count = 3          # long "arbitrary" grid, small blocks
                r_t = max(r_align,
                          _round_down(avail // (3 * pre_t * post_t * in_item),
                                      r_align))

    r_steps = -(-R // r_t)
    ragged = (R % r_t) != 0
    pre_steps = -(-pre // pre_t)
    grid = (pre_steps, post_steps, r_steps)

    scratch = []
    if r_steps == 1:
        kernel = functools.partial(_mean_whole_kernel, inv_r=1.0 / R,
                                   axis=1, keepdims=False)
    elif jnp.dtype(out_dtype) == jnp.float32:
        kernel = functools.partial(_mean_tiled_direct_kernel, inv_r=1.0 / R,
                                   r_axis=2, r_tile=r_t, r_total=R,
                                   ragged=ragged, axis=1, keepdims=False)
    else:
        kernel = functools.partial(_mean_tiled_scratch_kernel, inv_r=1.0 / R,
                                   r_axis=2, r_tile=r_t, r_total=R,
                                   ragged=ragged, axis=1, keepdims=False)
        scratch = [pltpu.VMEM((pre_t, post_t), jnp.float32)]

    return pl.pallas_call(
        kernel,
        out_shape=jax.ShapeDtypeStruct((pre, post), out_dtype),
        grid_spec=pltpu.PrefetchScalarGridSpec(
            num_scalar_prefetch=0,
            grid=grid,
            in_specs=[_in_spec((pre_t, r_t, post_t),
                               lambda i, j, r: (i, r, j), buffer_count)],
            out_specs=pl.BlockSpec((pre_t, post_t), lambda i, j, r: (i, j)),
            scratch_shapes=scratch,
        ),
        compiler_params=pltpu.CompilerParams(
            dimension_semantics=("parallel", "parallel", "arbitrary"),
            vmem_limit_bytes=vmem_limit,
        ),
    )(x3)


def _mean_last_axis(x2, out_dtype, force_r_tile=None):
    """Mean over axis 1 of x2 = (pre, R): R rides the 128-lane axis so DMA and
    VPU width are not wasted on a size-1 trailing dim.  Returns (pre, 1)."""
    pre, R = (int(d) for d in x2.shape)
    in_item = jnp.dtype(x2.dtype).itemsize
    out_item = jnp.dtype(out_dtype).itemsize
    budget, vmem_limit = _vmem_budget()

    # pre is the sublane dim of BOTH the input and the output block here.
    pre_align = max(_sublane(x2.dtype), _sublane(out_dtype))
    min_pre = pre if pre <= pre_align else pre_align

    buffer_count = 2
    if force_r_tile is not None:
        pre_t = min_pre
        r_t = R if force_r_tile >= R else max(128, _round_down(force_r_tile, 128))
    else:
        per_row_whole = 2 * R * in_item + 2 * out_item
        if per_row_whole * min_pre <= budget:
            r_t = R
            pre_t = budget // per_row_whole
            if pre > pre_align:
                pre_t = min(pre_t, _round_up(-(-pre // 2), pre_align))
            pre_t = min(pre_t, pre)
            if pre_t < pre:
                pre_t = max(pre_align, _round_down(pre_t, pre_align))
        else:
            pre_t = min_pre
            fixed = 2 * pre_t * out_item + pre_t * 4
            avail = max(budget - fixed, 0)
            r_t = max(128, _round_down(avail // (2 * pre_t * in_item), 128))
            r_t = min(r_t, R)
            if -(-R // r_t) >= 8:
                buffer_count = 3
                r_t = max(128, _round_down(avail // (3 * pre_t * in_item), 128))

    r_steps = -(-R // r_t)
    ragged = (R % r_t) != 0
    pre_steps = -(-pre // pre_t)
    grid = (pre_steps, r_steps)

    scratch = []
    if r_steps == 1:
        kernel = functools.partial(_mean_whole_kernel, inv_r=1.0 / R,
                                   axis=1, keepdims=True)
    elif jnp.dtype(out_dtype) == jnp.float32:
        kernel = functools.partial(_mean_tiled_direct_kernel, inv_r=1.0 / R,
                                   r_axis=1, r_tile=r_t, r_total=R,
                                   ragged=ragged, axis=1, keepdims=True)
    else:
        kernel = functools.partial(_mean_tiled_scratch_kernel, inv_r=1.0 / R,
                                   r_axis=1, r_tile=r_t, r_total=R,
                                   ragged=ragged, axis=1, keepdims=True)
        scratch = [pltpu.VMEM((pre_t, 1), jnp.float32)]

    return pl.pallas_call(
        kernel,
        out_shape=jax.ShapeDtypeStruct((pre, 1), out_dtype),
        grid_spec=pltpu.PrefetchScalarGridSpec(
            num_scalar_prefetch=0,
            grid=grid,
            in_specs=[_in_spec((pre_t, r_t), lambda i, r: (i, r), buffer_count)],
            out_specs=pl.BlockSpec((pre_t, 1), lambda i, r: (i, 0)),
            scratch_shapes=scratch,
        ),
        compiler_params=pltpu.CompilerParams(
            dimension_semantics=("parallel", "arbitrary"),
            vmem_limit_bytes=vmem_limit,
        ),
    )(x2)


def _mean_pass(x, d_start, d_end, out_dtype, force_r_tile=None):
    """One HBM pass: mean over the contiguous axes [d_start, d_end] of x.
    Returns the result with those axes kept as size-1 (keepdim=True)."""
    shape = tuple(int(d) for d in x.shape)
    pre = math.prod(shape[:d_start])
    R = math.prod(shape[d_start:d_end + 1])
    post = math.prod(shape[d_end + 1:])
    kept = shape[:d_start] + (1,) * (d_end - d_start + 1) + shape[d_end + 1:]

    if R == 1:
        return x.astype(out_dtype)

    if pre * R * post < _XLA_FALLBACK_ELEMS:
        # Tiny reduction: kernel launch overhead dominates; let XLA fuse it.
        axes = tuple(range(d_start, d_end + 1))
        return jnp.mean(x.astype(jnp.float32), axis=axes,
                        keepdims=True).astype(out_dtype)

    if post == 1:
        res = _mean_last_axis(x.reshape(pre, R), out_dtype, force_r_tile)
    else:
        res = _mean_mid_axes(x.reshape(pre, R, post), out_dtype, force_r_tile)
    return res.reshape(kept)


# ---------------------------------------------------------------------------
# Public API (matches the PyTorch module)
# ---------------------------------------------------------------------------
def mean_forward(x, dim, keep_dim=False, *, force_r_tile=None):
    """Pallas equivalent of torch `input.mean(dim, keep_dim)` (int or tuple)."""
    ndim = x.ndim
    if isinstance(dim, (list, tuple)):
        dims = sorted(set(d % ndim for d in dim))
    else:
        dims = [dim % ndim]

    # Fuse contiguous reduction dims into single passes (one HBM read each).
    groups = []
    for d in dims:
        if groups and d == groups[-1][-1] + 1:
            groups[-1].append(d)
        else:
            groups.append([d])

    # Non-contiguous groups: reduce the largest-R group first (minimizes bytes
    # of every later pass); keep intermediates in float32 between passes.
    shape = tuple(int(s) for s in x.shape)
    order = sorted(range(len(groups)),
                   key=lambda g: -math.prod(shape[d] for d in groups[g]))

    out = x
    orig_dtype = x.dtype
    for n, g in enumerate(order):
        grp = groups[g]
        last = (n == len(order) - 1)
        out_dtype = orig_dtype if last else jnp.float32
        out = _mean_pass(out, grp[0], grp[-1], out_dtype,
                         force_r_tile=force_r_tile)

    if not keep_dim:
        out = jnp.squeeze(out, axis=tuple(dims))
    return out


class Mean:
    """Mirror of the PyTorch `Mean` module."""

    def __init__(self, dim, keep_dim=False):
        self.dim = dim
        self.keep_dim = keep_dim

    def __call__(self, x):
        return mean_forward(x, self.dim, self.keep_dim)


if __name__ == "__main__":
    key = jax.random.PRNGKey(0)
    k0, k1, k2 = jax.random.split(key, 3)

    # encnet applies Mean to the Encoding output (B, K, D) with dim=1.
    B, K, D = 2, 32, 128
    x = jax.random.normal(k0, (B, K, D), dtype=jnp.float32)

    # 1) module-equivalent call: dim=1, keep_dim=False (whole-R mid-axis path).
    out = jax.block_until_ready(Mean(dim=1)(x))
    ref = jnp.mean(x, axis=1)
    assert out.shape == ref.shape
    assert jnp.allclose(out, ref, atol=1e-5, rtol=1e-5)

    # 2) keep_dim=True.
    out_kd = jax.block_until_ready(mean_forward(x, dim=1, keep_dim=True))
    assert out_kd.shape == (B, 1, D)
    assert jnp.allclose(out_kd[:, 0, :], ref, atol=1e-5, rtol=1e-5)

    # 3) last-axis mean (post == 1 path: R on the 128-lane axis).
    out_last = jax.block_until_ready(mean_forward(x, dim=-1))
    assert jnp.allclose(out_last, jnp.mean(x, axis=-1), atol=1e-5, rtol=1e-5)

    # 4) contiguous multi-dim mean fused into one HBM pass, bf16 input/output.
    xb = x.astype(jnp.bfloat16)
    out_bf = jax.block_until_ready(mean_forward(xb, dim=(1, 2), keep_dim=True))
    ref_bf = jnp.mean(xb.astype(jnp.float32), axis=(1, 2), keepdims=True)
    assert out_bf.shape == (B, 1, 1) and out_bf.dtype == jnp.bfloat16
    assert jnp.allclose(out_bf.astype(jnp.float32), ref_bf, atol=2e-2, rtol=2e-2)

    # 5) non-contiguous dims: two passes, f32 intermediate, largest-R first.
    y = jax.random.normal(k1, (4, 8, 128), dtype=jnp.float32)
    out_nc = jax.block_until_ready(mean_forward(y, dim=(0, 2)))
    assert jnp.allclose(out_nc, jnp.mean(y, axis=(0, 2)), atol=1e-5, rtol=1e-5)

    # 6) tiled / ragged reduction axis (accumulator kernels + iota mask).
    z = jax.random.normal(k2, (2, 36, 128), dtype=jnp.float32)
    ref_z = jnp.mean(z, axis=1)
    out_t = jax.block_until_ready(mean_forward(z, dim=1, force_r_tile=8))
    assert jnp.allclose(out_t, ref_z, atol=1e-5, rtol=1e-5)
    zb = z.astype(jnp.bfloat16)
    out_tb = jax.block_until_ready(mean_forward(zb, dim=1, force_r_tile=16))
    ref_zb = jnp.mean(zb.astype(jnp.float32), axis=1)
    assert jnp.allclose(out_tb.astype(jnp.float32), ref_zb, atol=2e-2, rtol=2e-2)

    # 7) tiled / ragged last-axis reduction (lane-mask path).
    w = jax.random.normal(k1, (16, 300), dtype=jnp.float32)
    out_w = jax.block_until_ready(mean_forward(w, dim=1, force_r_tile=128))
    assert jnp.allclose(out_w, jnp.mean(w, axis=1), atol=1e-5, rtol=1e-5)

    print("KERNEL_OK")
</pallas_src>

<mosaic_0001>
module attributes {stable_mosaic.version = 11 : i64} {
  func.func @_mean_whole_kernel(%arg0: i32, %arg1: i32, %arg2: i32, %arg3: memref<2x32x128xf32, #tpu.memory_space<vmem>>, %arg4: memref<2x128xf32, #tpu.memory_space<vmem>>) attributes {dimension_semantics = [#tpu.dimension_semantics<parallel>, #tpu.dimension_semantics<parallel>, #tpu.dimension_semantics<arbitrary>], iteration_bounds = array<i64: 1, 1, 1>, scalar_prefetch = 0 : i64, scratch_operands = 0 : i64, tpu.core_type = #tpu.core_type<tc>, window_params = [{transform_indices = @transform_0, window_bounds = array<i64: 2, 32, 128>}, {transform_indices = @transform_1, window_bounds = array<i64: 2, 128>}]} {
    %c0 = arith.constant 0 : index
    %c0_0 = arith.constant 0 : index
    %c0_1 = arith.constant 0 : index
    %0 = vector.load %arg3[%c0, %c0_0, %c0_1] : memref<2x32x128xf32, #tpu.memory_space<vmem>>, vector<2x32x128xf32>
    %cst = arith.constant dense<0.000000e+00> : vector<2x128xf32>
    %1 = vector.multi_reduction <add>, %0, %cst [1] : vector<2x32x128xf32> to vector<2x128xf32>
    %cst_2 = arith.constant 3.125000e-02 : f32
    %2 = vector.broadcast %cst_2 : f32 to vector<2x128xf32>
    %3 = arith.mulf %1, %2 : vector<2x128xf32>
    %c0_3 = arith.constant 0 : index
    %c0_4 = arith.constant 0 : index
    %4 = vector.load %arg4[%c0_3, %c0_4] : memref<2x128xf32, #tpu.memory_space<vmem>>, vector<2x128xf32>
    tpu.vector_store %arg4[%c0_3, %c0_4], %3 {strides = array<i32>} : memref<2x128xf32, #tpu.memory_space<vmem>>, vector<2x128xf32>,
    return
  }
  func.func @transform_0(%arg0: i32, %arg1: i32, %arg2: i32) -> (i32, i32, i32) {
    %c0_i32 = arith.constant 0 : i32
    return %arg0, %arg2, %arg1 : i32, i32, i32
  }
  func.func @transform_1(%arg0: i32, %arg1: i32, %arg2: i32) -> (i32, i32) {
    %c0_i32 = arith.constant 0 : i32
    return %arg0, %arg1 : i32, i32
  }
}

</mosaic_0001>

<bundles_post_ra>
// kernel: tpu_custom_call.1
= control target key start
LH: loop header
LB: loop body
LE: loop exit
PB: predicated region body
PF: predicated region fallthrough
CT: control target
= control target key end

     0   :  { %6 = vsyncpa [#allocation3], 0  ;;  %s162_s0 = inlined_call_operand.hbm [shape: f32[2,32,128], index: 0, kind: input, shape index: {}]   ;;  %s163_s1 = inlined_call_operand.hbm [shape: f32[2,128], index: 1, kind: output, shape index: {}]  }
   0x1   :  { %7 = vsyncpa [#allocation4], 0  ;;  %s124_s6 = smov [#allocation2]   ;;  %s76_s10 = scalar_lea.hbm %s162_s0, 1024 }
   0x2   :  { %s13_s7 = sshll.u32 %s124_s6, 4  ;;  %p77_p0 = scmp.ne.s32.totalorder %s162_s0, %s76_s10  ;;  %s14_s7 = int_to_ptr.vmem [resolvable:$true] %s13_s7 }
   0x3   :  { %p80_p1 = scmp.lt.u32.totalorder %s76_s10, %s162_s0 }
   0x5   :  { %p82_p2 = pnand %p80_p1, %p77_p0 }
   0x7   :  { %85 = shalt.err (!%p82_p2)
}
   0x8   :  { %s86_s15 = scalar_lea.vmem %s14_s7, 1024  ;;  %p91_p4 = scmp.lt.s32.totalorder %s14_s7, %s14_s7 }
   0x9   :  { %p87_p3 = scmp.ne.s32.totalorder %s14_s7, %s86_s15  ;;  %p92_p5 = scmp.lt.s32.totalorder %s86_s15, %s86_s15 }
   0xb   :  { %p93_p6 = por %p92_p5, %p91_p4 }
   0xd   :  { %p94_p7 = pnand %p93_p6, %p87_p3 }
   0xf   :  { %97 = shalt.err (!%p94_p7)
}
  0x10   :  { %s125_s16 = smov 128   ;;  %s126_s17 = smov 8  }
  0x11   :  { %19 = dma.hbm_to_vmem [thread:$0]  %s162_s0, 1024, %s14_s7, [#allocation3], %s125_s16, %s125_s16, %s126_s17  }
  0x12   :  { %120 = dma.done.wait [#allocation3], 1024  }
  0x13   :  { %121 = vsyncadd [#allocation3], 4294966272  ;;  %v23_v0 = vld [vmem:[#allocation2] sm:$0xff]  ;;  %v24_v1 = vld [vmem:[#allocation2 + $0x8] sm:$0xff]  ;;  %s127_s0 = smov [#allocation5]   ;;  %vm53_vm0 = vcmask 1041409  }
  0x14   :  { %v25_v2 = vld [vmem:[#allocation2 + $0x10] sm:$0xff]  ;;  %v27_v3 = vld [vmem:[#allocation2 + $0x20] sm:$0xff]  ;;  %v28_v4 = vld [vmem:[#allocation2 + $0x28] sm:$0xff]  ;;  %v31_v5 = vadd.f32 %v24_v1, %v23_v0  ;;  %s63_s20 = sshll.u32 %s127_s0, 4  ;;  %s64_s20 = int_to_ptr.vmem [resolvable:$true] %s63_s20 }
  0x15   :  { %v26_v6 = vld [vmem:[#allocation2 + $0x18] sm:$0xff]  ;;  %v29_v7 = vld [vmem:[#allocation2 + $0x30] sm:$0xff]  ;;  %v40_v8 = vadd.f32 %v28_v4, %v27_v3  ;;  %s98_s21 = scalar_lea.vmem %s64_s20, 32  ;;  %p103_p9 = scmp.lt.s32.totalorder %s64_s20, %s64_s20 }
  0x16   :  { %v30_v9 = vld [vmem:[#allocation2 + $0x38] sm:$0xff]  ;;  %v32_v10 = vadd.f32 %v31_v5, %v25_v2  ;;  %p99_p8 = scmp.ne.s32.totalorder %s64_s20, %s98_s21  ;;  %p104_p10 = scmp.lt.s32.totalorder %s98_s21, %s98_s21 }
  0x17   :  { %v41_v11 = vadd.f32 %v40_v8, %v29_v7 }
  0x18   :  { %v33_v12 = vadd.f32 %v32_v10, %v26_v6  ;;  %p105_p11 = por %p104_p10, %p103_p9 }
  0x19   :  { %v42_v13 = vadd.f32 %v41_v11, %v30_v9 }
  0x1a   :  { %v34_v14 = vrot.slane %v33_v12, 4  ;;  %p106_p12 = pnand %p105_p11, %p99_p8 }
  0x1b   :  { %v43_v15 = vrot.slane %v42_v13, 4 }
  0x1c   :  { %v35_v16 = vadd.f32 %v34_v14, %v33_v12 }
  0x1d   :  { %v44_v17 = vadd.f32 %v43_v15, %v42_v13 }
  0x1e   :  { %v36_v18 = vrot.slane %v35_v16, 2 }
  0x1f   :  { %v45_v19 = vrot.slane %v44_v17, 2 }
  0x20   :  { %v37_v20 = vadd.f32 %v36_v18, %v35_v16 }
  0x21   :  { %v46_v21 = vadd.f32 %v45_v19, %v44_v17 }
  0x22   :  { %v38_v22 = vrot.slane %v37_v20, 1 }
  0x23   :  { %v47_v23 = vrot.slane %v46_v21, 1 }
  0x24   :  { %v39_v24 = vadd.f32 %v38_v22, %v37_v20 }
  0x25   :  { %v48_v25 = vadd.f32 %v47_v23, %v46_v21 }
  0x26   :  { %v49_v26 = vmul.f32 0.03125, %v39_v24 }
  0x27   :  { %v50_v27 = vmul.f32 0.03125, %v48_v25 }
  0x29   :  { %v54_v28 = vsel %vm53_vm0, %v50_v27, %v49_v26 }
  0x2a   :  { %56 = vst [vmem:[#allocation5] sm:$0x3] %v54_v28 }
  0x2b   :  { %109 = shalt.err (!%p106_p12)
}
  0x2c   :  { %s110_s24 = scalar_lea.hbm %s163_s1, 32 }
  0x2d   :  { %p111_p13 = scmp.ne.s32.totalorder %s163_s1, %s110_s24  ;;  %p114_p0 = scmp.lt.u32.totalorder %s110_s24, %s163_s1 }
  0x2f   :  { %p116_p1 = pnand %p114_p0, %p111_p13 }
  0x31   :  { %119 = shalt.err (!%p116_p1)
}
  0x32   :  { %66 = dma.vmem_to_hbm [thread:$0]  %s64_s20, 32, %s163_s1, [#allocation4]  }
  0x33   :  { %122 = dma.done.wait [#allocation4], 32  }
  0x34   :  { %123 = vsyncadd [#allocation4], 4294967264 }
  0x35   :  { %70 = vsyncpa [#allocation3], 1 }
  0x36   :  { %71 = vsyncpa [#allocation4], 1 }

</bundles_post_ra>
